<compile_context>
chip_gen: v7x
topology: tpu7x:2x2x1
jax: 0.10.0
libtpu: 0.0.40
codegen_flags: <defaults>
</compile_context>

<pallas_src>
import functools

import jax
import jax.numpy as jnp
from jax import lax
from jax.experimental import pallas as pl
from jax.experimental.pallas import tpu as pltpu


def _int_pow(v, n: int):
    """v**n for integer n >= 1 via square-and-multiply (~log2(n) full-width muls)."""
    result = None
    base = v
    while n > 0:
        if n & 1:
            result = base if result is None else result * base
        n >>= 1
        if n:
            base = base * base
    return result


def _small_int_gamma(gamma: float):
    gi = int(round(gamma))
    return (float(gi) == float(gamma)) and (1 <= gi <= 32), gi


# --------------------------------------------------------------------------------------
# Per-tile focal-loss math
# --------------------------------------------------------------------------------------

def _focal_tile_packed(x, t, gamma: float, approx: bool):
    """Packed layout: x (C, TS, 128) f32 logits, t (TS, 128) int32 targets -> (TS, 128).

    Class axis is the leading axis; all class reductions are unrolled elementwise
    VPU chains over fully packed (8,128) vregs.
    """
    C = x.shape[0]
    xs = [x[c] for c in range(C)]
    zs = [t == c for c in range(C)]

    m = xs[0]
    for c in range(1, C):
        m = jnp.maximum(m, xs[c])
    exs = [jnp.exp(v - m) for v in xs]                 # the only full-width exp (int gamma)
    s = exs[0]
    for c in range(1, C):
        s = s + exs[c]
    logS = m + jnp.log(s)                              # logsumexp

    x_t = jnp.where(zs[0], xs[0], 0.0)
    for c in range(1, C):
        x_t = jnp.where(zs[c], xs[c], x_t)
    ce = logS - x_t                                    # cross entropy: -log p_t

    if gamma == 0.0:
        return ce

    p_t = jnp.exp(x_t - logS)                          # small EUP exp (slab-sized)
    one_minus_pt = jnp.maximum(1.0 - p_t, 0.0)

    is_int, gi = _small_int_gamma(gamma)
    if is_int:
        inv_s = pl.reciprocal(s, approx=approx)
        pg_sum = _int_pow(exs[0] * inv_s, gi)
        for c in range(1, C):
            pg_sum = pg_sum + _int_pow(exs[c] * inv_s, gi)
        pt_g = _int_pow(p_t, gi)
        pos = _int_pow(one_minus_pt, gi)
    else:
        pg_sum = jnp.exp(gamma * (xs[0] - logS))
        for c in range(1, C):
            pg_sum = pg_sum + jnp.exp(gamma * (xs[c] - logS))
        pt_g = jnp.exp(gamma * (x_t - logS))
        pos = jnp.exp(gamma * jnp.log(one_minus_pt))

    # sum_j focal_j = sum_j p_j^g - p_t^g + (1 - p_t)^g   (no per-class select needed)
    return (ce * (1.0 / C)) * (pg_sum - pt_g + pos)


def _focal_tile_flat(x, t, gamma: float, approx: bool):
    """Fallback layout: x (C, TL) f32, t (1, TL) int32 -> (1, TL).

    Class axis lives on sublanes; class reductions are sublane reductions.
    """
    C = x.shape[0]
    cls = lax.broadcasted_iota(jnp.int32, x.shape, 0)
    z = cls == t

    m = jnp.max(x, axis=0, keepdims=True)
    ex = jnp.exp(x - m)
    s = jnp.sum(ex, axis=0, keepdims=True)
    logS = m + jnp.log(s)
    x_t = jnp.sum(jnp.where(z, x, 0.0), axis=0, keepdims=True)
    ce = logS - x_t

    if gamma == 0.0:
        return ce

    p_t = jnp.exp(x_t - logS)
    one_minus_pt = jnp.maximum(1.0 - p_t, 0.0)

    is_int, gi = _small_int_gamma(gamma)
    if is_int:
        inv_s = pl.reciprocal(s, approx=approx)
        pg_sum = jnp.sum(_int_pow(ex * inv_s, gi), axis=0, keepdims=True)
        pt_g = _int_pow(p_t, gi)
        pos = _int_pow(one_minus_pt, gi)
    else:
        pg_sum = jnp.sum(jnp.exp(gamma * (x - logS)), axis=0, keepdims=True)
        pt_g = jnp.exp(gamma * (x_t - logS))
        pos = jnp.exp(gamma * jnp.log(one_minus_pt))

    return (ce * (1.0 / C)) * (pg_sum - pt_g + pos)


# --------------------------------------------------------------------------------------
# Kernels
# --------------------------------------------------------------------------------------

def _elem_kernel_packed(x_ref, t_ref, o_ref, *, gamma, approx):
    loss = _focal_tile_packed(x_ref[0].astype(jnp.float32), t_ref[0, 0], gamma, approx)
    o_ref[0, 0] = loss.astype(o_ref.dtype)


def _partial_kernel_packed(x_ref, t_ref, o_ref, *, gamma, approx, rows, ts, needs_mask):
    loss = _focal_tile_packed(x_ref[0].astype(jnp.float32), t_ref[0, 0], gamma, approx)
    if needs_mask:                                       # static: skipped for aligned shapes
        r = lax.broadcasted_iota(jnp.int32, loss.shape, 0)
        valid = (pl.program_id(1) * ts + r) < rows
        loss = jnp.where(valid, loss, 0.0)
    o_ref[0] = jnp.sum(loss, axis=0, keepdims=True)      # (1, 128) lane-partial sums


def _elem_kernel_flat(x_ref, t_ref, o_ref, *, gamma, approx):
    loss = _focal_tile_flat(x_ref[0].astype(jnp.float32), t_ref[0], gamma, approx)
    o_ref[0] = loss.astype(o_ref.dtype)


def _partial_kernel_flat(x_ref, t_ref, o_ref, *, gamma, approx, hw, tl, needs_mask):
    loss = _focal_tile_flat(x_ref[0].astype(jnp.float32), t_ref[0], gamma, approx)
    if needs_mask:                                       # static: skipped for aligned shapes
        lane = lax.broadcasted_iota(jnp.int32, loss.shape, 1)
        valid = (pl.program_id(1) * tl + lane) < hw
        loss = jnp.where(valid, loss, 0.0)
    partial = jnp.sum(loss, axis=1, keepdims=True)       # (1, 1)
    o_ref[0] = jnp.broadcast_to(partial, (1, 128))       # lane-aligned tiny store


# --------------------------------------------------------------------------------------
# Wrapper
# --------------------------------------------------------------------------------------

def _f32_tile_budget() -> int:
    """Byte budget for the f32 working copy of one logits tile.

    128 MiB-VMEM parts (v5e/v6e): 4 MiB tiles; 64 MiB-VMEM parts (v7x): 2 MiB tiles so
    the full accounted working set stays well under ~48 MiB.
    """
    try:
        big_vmem = int(pltpu.get_tpu_info().vmem_capacity_bytes) >= (100 << 20)
    except Exception:
        big_vmem = False
    return (4 << 20) if big_vmem else (2 << 20)


def categorical_focal_loss_pallas(logits, target, gamma,
                                  pos_weight=None, label_smoothing=None,
                                  reduction: str = "mean", normalize: bool = False,
                                  out_dtype=None, f32_tile_budget=None,
                                  approx_reciprocal: bool = False):
    """JAX/Pallas equivalent of combustion's categorical_focal_loss forward pass.

    out_dtype (reduction='none' only) defaults to float32 to match the PyTorch reference;
    pass jnp.bfloat16 on bandwidth-bound chips (v5e) to halve the loss writeback traffic.
    approx_reciprocal=True moves 1/s onto the EUP approximate-reciprocal path (focal
    weight only, never the CE term) -- a micro-opt that trades ~1e-4 relative accuracy.
    """
    if pos_weight is not None:
        # The PyTorch reference also raises NotImplementedError for this path.
        raise NotImplementedError("positive example weighting not yet implemented")
    # TODO(synk): label_smoothing clamps *integer* class indices in the reference code
    # (an ill-defined no-op path for hard labels); only label_smoothing=None is supported.
    if label_smoothing is not None:
        raise NotImplementedError("label_smoothing not supported in the Pallas port")
    del normalize  # accepted but never applied in the reference implementation body
    if reduction not in ("none", "mean", "sum"):
        raise ValueError(f"unknown reduction {reduction!r}")

    N, C = int(logits.shape[0]), int(logits.shape[1])
    hw = 1
    for d in logits.shape[2:]:
        hw *= int(d)
    if hw == 0:
        raise ValueError("empty spatial extent")

    itemsize = jnp.dtype(logits.dtype).itemsize
    budget = int(f32_tile_budget) if f32_tile_budget else _f32_tile_budget()
    out_dtype = jnp.float32 if out_dtype is None else out_dtype
    gamma = float(gamma)
    approx = bool(approx_reciprocal)

    # Small-C packed layout: spatial axis folded onto (sublane, lane) = (rows, 128),
    # class axis leading -> class reductions become elementwise VPU chains.
    packed = (C <= 8) and (hw % 128 == 0)

    if packed:
        rows = hw // 128
        max_ts = max(8, (budget // (C * 128 * 4)) // 8 * 8)
        ts = rows if rows <= max_ts else max_ts
        n_tiles = pl.cdiv(rows, ts)
        needs_mask = (rows % ts) != 0
        elems = ts * 128

        x = logits.reshape(N, C, rows, 128)                       # free metadata reshape
        t = target.reshape(N, 1, rows, 128).astype(jnp.int32)

        in_specs = [
            pl.BlockSpec((1, C, ts, 128), lambda n, s: (n, 0, s, 0)),
            pl.BlockSpec((1, 1, ts, 128), lambda n, s: (n, 0, s, 0)),
        ]
    else:
        if hw <= 128:
            tl = hw
        else:
            hw_cap = (hw // 128) * 128
            tl = max(128, (budget // (C * 4)) // 128 * 128)
            tl = min(tl, hw_cap)
        n_tiles = pl.cdiv(hw, tl)
        needs_mask = (hw % tl) != 0
        elems = tl

        x = logits.reshape(N, C, hw)                              # free metadata reshape
        t = target.reshape(N, 1, hw).astype(jnp.int32)

        in_specs = [
            pl.BlockSpec((1, C, tl), lambda n, s: (n, 0, s)),
            pl.BlockSpec((1, 1, tl), lambda n, s: (n, 0, s)),
        ]

    grid = (N, n_tiles)

    # Explicit VMEM accounting: double-buffered in/out tiles + live f32 temporaries
    # (incl. the f32 cast of a bf16 logits tile).  Clamped <= 48 MiB so the same limit
    # is safe under v7x's 64 MiB physical VMEM while still using v5e/v6e headroom.
    bytes_in = C * elems * itemsize
    bytes_tgt = elems * 4
    bytes_out = elems * jnp.dtype(out_dtype).itemsize if reduction == "none" else 128 * 4
    working = 2 * (bytes_in + bytes_tgt + bytes_out) + 8 * (C * elems * 4) + (2 << 20)
    compiler_params = pltpu.CompilerParams(
        dimension_semantics=("parallel", "parallel"),   # both axes own distinct outputs
        vmem_limit_bytes=int(min(max(working, 32 << 20), 48 << 20)),
    )

    if reduction in ("mean", "sum"):
        if packed:
            kernel = functools.partial(_partial_kernel_packed, gamma=gamma, approx=approx,
                                       rows=rows, ts=ts, needs_mask=needs_mask)
        else:
            kernel = functools.partial(_partial_kernel_flat, gamma=gamma, approx=approx,
                                       hw=hw, tl=tl, needs_mask=needs_mask)
        partials = pl.pallas_call(
            kernel,
            out_shape=jax.ShapeDtypeStruct((N * n_tiles, 1, 128), jnp.float32),
            grid=grid,
            in_specs=in_specs,
            out_specs=pl.BlockSpec((1, 1, 128), lambda n, s: (n * n_tiles + s, 0, 0)),
            compiler_params=compiler_params,
        )(x, t)
        # packed tiles store lane-wise column sums; flat tiles broadcast a scalar.
        total = jnp.sum(partials) if packed else jnp.sum(partials[:, 0, 0])
        if reduction == "mean":
            return total / (N * hw)
        return total

    # reduction == 'none': dense per-element loss in the native layout.
    if packed:
        out = pl.pallas_call(
            functools.partial(_elem_kernel_packed, gamma=gamma, approx=approx),
            out_shape=jax.ShapeDtypeStruct((N, 1, rows, 128), out_dtype),
            grid=grid,
            in_specs=in_specs,
            out_specs=pl.BlockSpec((1, 1, ts, 128), lambda n, s: (n, 0, s, 0)),
            compiler_params=compiler_params,
        )(x, t)
    else:
        out = pl.pallas_call(
            functools.partial(_elem_kernel_flat, gamma=gamma, approx=approx),
            out_shape=jax.ShapeDtypeStruct((N, 1, hw), out_dtype),
            grid=grid,
            in_specs=in_specs,
            out_specs=pl.BlockSpec((1, 1, tl), lambda n, s: (n, 0, s)),
            compiler_params=compiler_params,
        )(x, t)
    return out.reshape(target.shape)


class CategoricalFocalLoss:
    """Mirror of the PyTorch module (no learned parameters)."""

    def __init__(self, gamma, pos_weight=None, label_smoothing=None,
                 reduction: str = "mean", normalize: bool = False):
        self.gamma = gamma
        self.alpha = pos_weight
        self.label_smoothing = label_smoothing
        self.reduction = reduction
        self.normalize = normalize

    def __call__(self, input, target):
        return categorical_focal_loss_pallas(
            input, target, self.gamma, self.alpha, self.label_smoothing,
            self.reduction, self.normalize)


# --------------------------------------------------------------------------------------
# Pure-JAX reference (matches PyTorch semantics) for verification
# --------------------------------------------------------------------------------------

def _ref_loss(logits, target, gamma, reduction="mean"):
    C = logits.shape[1]
    x = jnp.moveaxis(logits, 1, -1).reshape(-1, C).astype(jnp.float32)
    t = target.reshape(-1)
    logS = jax.scipy.special.logsumexp(x, axis=-1, keepdims=True)
    logp = x - logS
    z = jax.nn.one_hot(t, C, dtype=jnp.bool_)
    ce = -jnp.sum(jnp.where(z, logp, 0.0), axis=-1)
    if gamma != 0:
        lse_nt = jax.scipy.special.logsumexp(jnp.where(z, -jnp.inf, x), axis=-1)
        pos = jnp.exp(gamma * (lse_nt - logS[:, 0]))
        neg = jnp.exp(gamma * logp)
        focal = jnp.where(z, pos[:, None], neg)
        loss = jnp.sum(focal * (ce[:, None] / C), axis=-1)
    else:
        loss = ce
    loss = loss.reshape(target.shape)
    if reduction == "mean":
        return jnp.mean(loss)
    if reduction == "sum":
        return jnp.sum(loss)
    return loss


if __name__ == "__main__":
    key = jax.random.PRNGKey(0)
    k1, k2, k3, k4 = jax.random.split(key, 4)

    N, C, H, W = 2, 4, 16, 16
    logits = jax.random.normal(k1, (N, C, H, W), dtype=jnp.float32)
    target = jax.random.randint(k2, (N, H, W), 0, C, dtype=jnp.int32)

    # mean reduction, integer gamma (packed VPU layout + in-kernel partial sums)
    loss = jax.block_until_ready(CategoricalFocalLoss(2.0, reduction="mean")(logits, target))
    ref = jax.block_until_ready(_ref_loss(logits, target, 2.0, "mean"))
    assert jnp.allclose(loss, ref, rtol=1e-4, atol=1e-6), (loss, ref)

    # no reduction (packed dense per-element output)
    loss_none = jax.block_until_ready(CategoricalFocalLoss(2.0, reduction="none")(logits, target))
    ref_none = jax.block_until_ready(_ref_loss(logits, target, 2.0, "none"))
    assert loss_none.shape == target.shape
    assert jnp.allclose(loss_none, ref_none, rtol=1e-4, atol=1e-6)

    # non-integer gamma (general transcendental path), sum reduction
    loss15 = jax.block_until_ready(CategoricalFocalLoss(1.5, reduction="sum")(logits, target))
    ref15 = jax.block_until_ready(_ref_loss(logits, target, 1.5, "sum"))
    assert jnp.allclose(loss15, ref15, rtol=1e-4, atol=1e-5), (loss15, ref15)

    # ragged spatial extent (hw % 128 != 0) -> sublane-layout fallback with tail masking
    H2, W2 = 16, 17
    logits2 = jax.random.normal(k3, (N, C, H2, W2), dtype=jnp.float32)
    target2 = jax.random.randint(k4, (N, H2, W2), 0, C, dtype=jnp.int32)
    loss2 = jax.block_until_ready(CategoricalFocalLoss(2.0, reduction="mean")(logits2, target2))
    ref2 = jax.block_until_ready(_ref_loss(logits2, target2, 2.0, "mean"))
    assert jnp.allclose(loss2, ref2, rtol=1e-4, atol=1e-6), (loss2, ref2)

    # ragged 'none' (boundary output blocks rely on Pallas masked partial stores)
    loss2n = jax.block_until_ready(CategoricalFocalLoss(2.0, reduction="none")(logits2, target2))
    ref2n = jax.block_until_ready(_ref_loss(logits2, target2, 2.0, "none"))
    assert loss2n.shape == target2.shape
    assert jnp.allclose(loss2n, ref2n, rtol=1e-4, atol=1e-6)

    print("KERNEL_OK")
</pallas_src>

<mosaic_0001>
module attributes {stable_mosaic.version = 11 : i64} {
  func.func @_partial_kernel_packed(%arg0: i32, %arg1: i32, %arg2: memref<1x4x2x128xf32, #tpu.memory_space<vmem>>, %arg3: memref<1x1x2x128xi32, #tpu.memory_space<vmem>>, %arg4: memref<1x1x128xf32, #tpu.memory_space<vmem>>) attributes {dimension_semantics = [#tpu.dimension_semantics<parallel>, #tpu.dimension_semantics<parallel>], iteration_bounds = array<i64: 2, 1>, scalar_prefetch = 0 : i64, scratch_operands = 0 : i64, tpu.core_type = #tpu.core_type<tc>, window_params = [{transform_indices = @transform_0, window_bounds = array<i64: 1, 4, 2, 128>}, {transform_indices = @transform_1, window_bounds = array<i64: 1, 1, 2, 128>}, {transform_indices = @transform_2, window_bounds = array<i64: 1, 1, 128>}]} {
    %c0 = arith.constant 0 : index
    %c0_0 = arith.constant 0 : index
    %c0_1 = arith.constant 0 : index
    %c0_2 = arith.constant 0 : index
    %0 = vector.load %arg2[%c0, %c0_0, %c0_1, %c0_2] : memref<1x4x2x128xf32, #tpu.memory_space<vmem>>, vector<1x4x2x128xf32>
    %1 = vector.shape_cast %0 : vector<1x4x2x128xf32> to vector<4x2x128xf32>
    %c0_3 = arith.constant 0 : index
    %c0_4 = arith.constant 0 : index
    %c0_5 = arith.constant 0 : index
    %c0_6 = arith.constant 0 : index
    %2 = vector.load %arg3[%c0_3, %c0_4, %c0_5, %c0_6] : memref<1x1x2x128xi32, #tpu.memory_space<vmem>>, vector<1x1x2x128xi32>
    %3 = vector.shape_cast %2 : vector<1x1x2x128xi32> to vector<2x128xi32>
    %4 = vector.extract_strided_slice %1 {offsets = [0, 0, 0], sizes = [1, 2, 128], strides = [1, 1, 1]} : vector<4x2x128xf32> to vector<1x2x128xf32>
    %5 = vector.shape_cast %4 : vector<1x2x128xf32> to vector<2x128xf32>
    %6 = vector.extract_strided_slice %1 {offsets = [1, 0, 0], sizes = [1, 2, 128], strides = [1, 1, 1]} : vector<4x2x128xf32> to vector<1x2x128xf32>
    %7 = vector.shape_cast %6 : vector<1x2x128xf32> to vector<2x128xf32>
    %8 = vector.extract_strided_slice %1 {offsets = [2, 0, 0], sizes = [1, 2, 128], strides = [1, 1, 1]} : vector<4x2x128xf32> to vector<1x2x128xf32>
    %9 = vector.shape_cast %8 : vector<1x2x128xf32> to vector<2x128xf32>
    %10 = vector.extract_strided_slice %1 {offsets = [3, 0, 0], sizes = [1, 2, 128], strides = [1, 1, 1]} : vector<4x2x128xf32> to vector<1x2x128xf32>
    %11 = vector.shape_cast %10 : vector<1x2x128xf32> to vector<2x128xf32>
    %c0_i32 = arith.constant 0 : i32
    %12 = vector.broadcast %c0_i32 : i32 to vector<2x128xi32>
    %13 = arith.cmpi eq, %3, %12 : vector<2x128xi32>
    %c1_i32 = arith.constant 1 : i32
    %14 = vector.broadcast %c1_i32 : i32 to vector<2x128xi32>
    %15 = arith.cmpi eq, %3, %14 : vector<2x128xi32>
    %c2_i32 = arith.constant 2 : i32
    %16 = vector.broadcast %c2_i32 : i32 to vector<2x128xi32>
    %17 = arith.cmpi eq, %3, %16 : vector<2x128xi32>
    %c3_i32 = arith.constant 3 : i32
    %18 = vector.broadcast %c3_i32 : i32 to vector<2x128xi32>
    %19 = arith.cmpi eq, %3, %18 : vector<2x128xi32>
    %20 = arith.maximumf %5, %7 : vector<2x128xf32>
    %21 = arith.maximumf %20, %9 : vector<2x128xf32>
    %22 = arith.maximumf %21, %11 : vector<2x128xf32>
    %23 = arith.subf %5, %22 : vector<2x128xf32>
    %24 = math.exp %23 : vector<2x128xf32>
    %25 = arith.subf %7, %22 : vector<2x128xf32>
    %26 = math.exp %25 : vector<2x128xf32>
    %27 = arith.subf %9, %22 : vector<2x128xf32>
    %28 = math.exp %27 : vector<2x128xf32>
    %29 = arith.subf %11, %22 : vector<2x128xf32>
    %30 = math.exp %29 : vector<2x128xf32>
    %31 = arith.addf %24, %26 : vector<2x128xf32>
    %32 = arith.addf %31, %28 : vector<2x128xf32>
    %33 = arith.addf %32, %30 : vector<2x128xf32>
    %34 = math.log %33 : vector<2x128xf32>
    %35 = arith.addf %22, %34 : vector<2x128xf32>
    %cst = arith.constant 0.000000e+00 : f32
    %36 = vector.broadcast %cst : f32 to vector<2x128xf32>
    %37 = arith.select %13, %5, %36 : vector<2x128xi1>, vector<2x128xf32>
    %38 = arith.select %15, %7, %37 : vector<2x128xi1>, vector<2x128xf32>
    %39 = arith.select %17, %9, %38 : vector<2x128xi1>, vector<2x128xf32>
    %40 = arith.select %19, %11, %39 : vector<2x128xi1>, vector<2x128xf32>
    %41 = arith.subf %35, %40 : vector<2x128xf32>
    %42 = arith.subf %40, %35 : vector<2x128xf32>
    %43 = math.exp %42 : vector<2x128xf32>
    %cst_7 = arith.constant 1.000000e+00 : f32
    %44 = vector.broadcast %cst_7 : f32 to vector<2x128xf32>
    %45 = arith.subf %44, %43 : vector<2x128xf32>
    %cst_8 = arith.constant 0.000000e+00 : f32
    %46 = vector.broadcast %cst_8 : f32 to vector<2x128xf32>
    %47 = arith.maximumf %45, %46 : vector<2x128xf32>
    %48 = tpu.reciprocal %33 : vector<2x128xf32> -> vector<2x128xf32>
    %49 = arith.mulf %24, %48 : vector<2x128xf32>
    %50 = arith.mulf %49, %49 : vector<2x128xf32>
    %51 = arith.mulf %26, %48 : vector<2x128xf32>
    %52 = arith.mulf %51, %51 : vector<2x128xf32>
    %53 = arith.addf %50, %52 : vector<2x128xf32>
    %54 = arith.mulf %28, %48 : vector<2x128xf32>
    %55 = arith.mulf %54, %54 : vector<2x128xf32>
    %56 = arith.addf %53, %55 : vector<2x128xf32>
    %57 = arith.mulf %30, %48 : vector<2x128xf32>
    %58 = arith.mulf %57, %57 : vector<2x128xf32>
    %59 = arith.addf %56, %58 : vector<2x128xf32>
    %60 = arith.mulf %43, %43 : vector<2x128xf32>
    %61 = arith.mulf %47, %47 : vector<2x128xf32>
    %cst_9 = arith.constant 2.500000e-01 : f32
    %62 = vector.broadcast %cst_9 : f32 to vector<2x128xf32>
    %63 = arith.mulf %41, %62 : vector<2x128xf32>
    %64 = arith.subf %59, %60 : vector<2x128xf32>
    %65 = arith.addf %64, %61 : vector<2x128xf32>
    %66 = arith.mulf %63, %65 : vector<2x128xf32>
    %cst_10 = arith.constant dense<0.000000e+00> : vector<128xf32>
    %67 = vector.multi_reduction <add>, %66, %cst_10 [0] : vector<2x128xf32> to vector<128xf32>
    %68 = vector.shape_cast %67 : vector<128xf32> to vector<1x128xf32>
    %c0_11 = arith.constant 0 : index
    %c0_12 = arith.constant 0 : index
    %c0_13 = arith.constant 0 : index
    %69 = vector.load %arg4[%c0_11, %c0_12, %c0_13] : memref<1x1x128xf32, #tpu.memory_space<vmem>>, vector<1x1x128xf32>
    %70 = vector.shape_cast %69 : vector<1x1x128xf32> to vector<1x128xf32>
    %71 = vector.shape_cast %68 : vector<1x128xf32> to vector<1x1x128xf32>
    tpu.vector_store %arg4[%c0_11, %c0_12, %c0_13], %71 {strides = array<i32>} : memref<1x1x128xf32, #tpu.memory_space<vmem>>, vector<1x1x128xf32>,
    return
  }
  func.func @transform_0(%arg0: i32, %arg1: i32) -> (i32, i32, i32, i32) {
    %c0_i32 = arith.constant 0 : i32
    %c0_i32_0 = arith.constant 0 : i32
    %c0_i32_1 = arith.constant 0 : i32
    return %arg0, %c0_i32, %arg1, %c0_i32_0 : i32, i32, i32, i32
  }
  func.func @transform_1(%arg0: i32, %arg1: i32) -> (i32, i32, i32, i32) {
    %c0_i32 = arith.constant 0 : i32
    %c0_i32_0 = arith.constant 0 : i32
    %c0_i32_1 = arith.constant 0 : i32
    return %arg0, %c0_i32, %arg1, %c0_i32_0 : i32, i32, i32, i32
  }
  func.func @transform_2(%arg0: i32, %arg1: i32) -> (i32, i32, i32) {
    %c1_i32 = arith.constant 1 : i32
    %0 = arith.muli %arg0, %c1_i32 : i32
    %1 = arith.addi %0, %arg1 : i32
    %c0_i32 = arith.constant 0 : i32
    %c0_i32_0 = arith.constant 0 : i32
    %c0_i32_1 = arith.constant 0 : i32
    return %1, %c0_i32, %c0_i32_0 : i32, i32, i32
  }
}

</mosaic_0001>

<bundles_post_ra>
// kernel: tpu_custom_call.1
= control target key start
LH: loop header
LB: loop body
LE: loop exit
PB: predicated region body
PF: predicated region fallthrough
CT: control target
= control target key end

     0   :  { %7 = vsyncpa [#allocation3], 0  ;;  %s884_s0 = inlined_call_operand.hbm [shape: f32[2,4,2,128], index: 0, kind: input, shape index: {}]   ;;  %s885_s1 = inlined_call_operand.hbm [shape: s32[2,1,2,128], index: 1, kind: input, shape index: {}]   ;;  %s886_s2 = inlined_call_operand.hbm [shape: f32[2,1,128], index: 2, kind: output, shape index: {}]  }
   0x1   :  { %9 = vsyncpa [#allocation3 + $0x1], 0 }
   0x2   :  { %10 = vsyncpa [#allocation6], 0 }
   0x3   :  { %12 = vsyncpa [#allocation6 + $0x1], 0 }
   0x4   :  { %13 = vsyncpa [#allocation4], 0 }
   0x5   :  { %15 = vsyncpa [#allocation4 + $0x1], 0  ;;  %s668_s9 = smov 0   ;;  %s670_s10 = smov 0  }
   0x6   :  { %s672_s11 = smov 0   ;;  %s674_s12 = smov 0  }
   0x7   :  { %s676_s13 = smov 0   ;;  %s678_s14 = smov 0  }
   0x8 LB: > { %s401_s15 = sadd.s32 4294967295, %s646_s14   ;;  %s402_s16 = sadd.s32 4294967294, %s646_s14   ;;  %s646_s14 = sphi %s678_s14, %s21_s14   ;;  %s642_s13 = sphi %s676_s13, %s905_s13   ;;  %s638_s12 = sphi %s674_s12, %s904_s12   ;;  %s634_s11 = sphi %s672_s11, %s903_s11   ;;  %s630_s10 = sphi %s670_s10, %s902_s10   ;;  %s626_s9 = sphi %s668_s9, %s901_s9  }
   0x9   : > { %s33_s17 = sadd.s32 1, %s642_s13  ;;  %s42_s18 = sadd.s32 1, %s634_s11 }
   0xa   : > { %p35_p0 = scmp.ge.s32.totalorder %s33_s17, 2  ;;  %p49_p1 = scmp.ne.s32.totalorder %s634_s11, %s630_s10 }
   0xb   : > { %p50_p2 = scmp.eq.s32.totalorder %s646_s14, 0  ;;  %p55_p3 = scmp.ne.s32.totalorder %s630_s10, %s626_s9 }
   0xc   : > { %s907_s17 = smov (%p35_p0, %s33_s17), 0  ;;  %p56_p5 = scmp.eq.s32.totalorder %s401_s15, 0 }
   0xd   : > { %p709_p4 = por %p50_p2, %p49_p1  ;;  %s37_s20 = ssub.s32 %s642_s13, %s907_s17 }
   0xe   : > { %p109_p6 = scmp.eq.s32.totalorder %s401_s15, 1  ;;  %p40_p7 = scmp.eq.s32.totalorder %s37_s20, 0 }
   0xf   : > { %p715_p8 = por %p56_p5, %p55_p3  ;;  %p115_p10 = scmp.eq.s32.totalorder %s402_s16, 1 }
  0x10   : > { %p719_p9 = por %p109_p6, %p49_p1  ;;  %p434_p13 = scmp.lt.s32.totalorder %s646_s14, 2 }
  0x11   : > { %s890_s21 = scalar_select %p715_p8, 1, 0 }
  0x12   : > { %s891_s22 = scalar_select %p719_p9, 1, 0 }
  0x13   : > { %s724_s23 = scalar_select %p40_p7, %s634_s11, %s42_s18  }
  0x14   : > { %p726_p11 = por %p115_p10, %p55_p3  ;;  %s733_s25 = sand.u32 1, %s634_s11  }
  0x15   : > { %s405_s26 = sshll.u32 %s733_s25, 3  ;;  %s416_s27 = sshll.u32 %s642_s13, 7 }
  0x16   : > { %s892_s24 = scalar_select %p726_p11, 1, 0 }
  0x17   : > { %s740_s30 = scalar_lea.hbm %s884_s0, %s416_s27  ;;  %s139_s3 = scalar_lea.vmem [#allocation2], %s405_s26 }
  0x18   : > { %s147_s4 = sshll.u32 %s139_s3, 4  ;;  %p746_p0 = pnand %p434_p13, %p709_p4  ;;  %s742_s4 = int_to_ptr.vmem [resolvable:$true] %s147_s4 }
  0x19   : > { %s136_s6 = scalar_lea.sflag [#allocation3], %s733_s25  ;;  %s500_s7 = scalar_lea.hbm %s740_s30, 128 }
  0x1a   : > { %p501_p2 = scmp.ne.s32.totalorder %s740_s30, %s500_s7  ;;  %p502_p3 = pneg %p746_p0 }
  0x1b   : > { %s505_s16 = scalar_lea.hbm %s884_s0, 256  ;;  %p506_p4 = scmp.lt.u32.totalorder %s740_s30, %s884_s0 }
  0x1c   : > { %p503_p5 = pnand %p502_p3, %p501_p2  ;;  %p507_p7 = scmp.lt.u32.totalorder %s505_s16, %s500_s7 }
  0x1d   : > { %p509_p13 = scmp.lt.u32.totalorder %s500_s7, %s740_s30 }
  0x1e   : > { %p504_p6 = pneg %p503_p5  ;;  %p508_p10 = por %p507_p7, %p506_p4 }
  0x20   : > { %p510_p12 = por %p509_p13, %p508_p10 }
  0x22   : > { %p511_p1 = pnand %p510_p12, %p504_p6 }
  0x24   : > { %514 = shalt.err (!%p511_p1)
}
  0x25   : > { %s515_s20 = scalar_lea.vmem %s742_s4, 128  ;;  %s648_s26 = smov [#allocation2]  }
  0x26   : > { %p516_p2 = scmp.ne.s32.totalorder %s742_s4, %s515_s20  ;;  %s520_s27 = sshll.u32 %s648_s26, 4  ;;  %s521_s27 = int_to_ptr.vmem [resolvable:$false] %s520_s27 }
  0x27   : > { %s522_s28 = scalar_lea.vmem %s521_s27, 256  ;;  %p523_p9 = scmp.lt.s32.totalorder %s742_s4, %s521_s27 }
  0x28   : > { %p518_p5 = pnand %p516_p2, %p502_p3  ;;  %p524_p4 = scmp.lt.s32.totalorder %s522_s28, %s515_s20 }
  0x2a   : > { %p519_p11 = pneg %p518_p5  ;;  %p525_p7 = por %p524_p4, %p523_p9 }
  0x2c   : > { %p526_p10 = pnand %p525_p7, %p519_p11 }
  0x2e   : > { %529 = shalt.err (!%p526_p10)
}
  0x2f   : > { %s649_s29 = smov 32   ;;  %s650_s3 = smov 2  }
  0x30   : > { %426 = dma.hbm_to_vmem [thread:$0]  (!%p746_p0), %s740_s30, 128, %s742_s4, %s136_s6, %s649_s29, %s649_s29, %s650_s3  }
  0x31   : > { %p174_p12 = scmp.lt.s32.totalorder %s646_s14, 3  ;;  %s408_s7 = sshll.u32 %s733_s25, 1 }
  0x32   : > { %s409_s8 = sshll.u32 %s642_s13, 5  ;;  %p894_p9 = scmp.ge.s32.totalorder %s646_s14, 1 }
  0x33   : > { %s791_s19 = scalar_lea.hbm %s885_s1, %s409_s8  ;;  %s161_s20 = scalar_lea.vmem [#allocation5], %s408_s7 }
  0x34   : > { %p784_p11 = pnand %p894_p9, %p174_p12  ;;  %s169_s26 = sshll.u32 %s161_s20, 4  ;;  %s170_s26 = int_to_ptr.vmem [resolvable:$true] %s169_s26 }
  0x35   : > { %s158_s30 = scalar_lea.sflag [#allocation6], %s733_s25  ;;  %s530_s4 = scalar_lea.hbm %s791_s19, 32 }
  0x36   : > { %s895_s15 = scalar_select %p784_p11, 1, 0 }
  0x37   : > { %p531_p1 = scmp.ne.s32.totalorder %s791_s19, %s530_s4  ;;  %s535_s28 = scalar_lea.hbm %s885_s1, 64 }
  0x38   : > { %p536_p2 = scmp.lt.u32.totalorder %s791_s19, %s885_s1  ;;  %p537_p5 = scmp.lt.u32.totalorder %s535_s28, %s530_s4 }
  0x39   : > { %p533_p6 = pnand %p531_p1, %p502_p3  ;;  %p539_p7 = scmp.lt.u32.totalorder %s530_s4, %s791_s19 }
  0x3a   : > { %p538_p4 = por %p537_p5, %p536_p2 }
  0x3b   : > { %p534_p13 = pneg %p533_p6 }
  0x3c   : > { %p540_p10 = por %p539_p7, %p538_p4 }
  0x3e   : > { %p541_p12 = pnand %p540_p10, %p534_p13 }
  0x40   : > { %544 = shalt.err (!%p541_p12)
}
  0x41   : > { %s545_s25 = scalar_lea.vmem %s170_s26, 32  ;;  %s651_s7 = smov [#allocation5]  }
  0x42   : > { %p546_p9 = scmp.ne.s32.totalorder %s170_s26, %s545_s25  ;;  %s550_s8 = sshll.u32 %s651_s7, 4  ;;  %s551_s8 = int_to_ptr.vmem [resolvable:$false] %s550_s8 }
  0x43   : > { %s552_s16 = scalar_lea.vmem %s551_s8, 64  ;;  %p553_p8 = scmp.lt.s32.totalorder %s170_s26, %s551_s8 }
  0x44   : > { %p548_p1 = pnand %p546_p9, %p502_p3  ;;  %p554_p11 = scmp.lt.s32.totalorder %s552_s16, %s545_s25 }
  0x46   : > { %p549_p6 = pneg %p548_p1  ;;  %p555_p2 = por %p554_p11, %p553_p8 }
  0x48   : > { %p556_p5 = pnand %p555_p2, %p549_p6 }
  0x4a   : > { %559 = shalt.err (!%p556_p5)
}
  0x4b   : > { %429 = dma.hbm_to_vmem [thread:$0]  (!%p746_p0), %s791_s19, 32, %s170_s26, %s158_s30  }
  0x4c   : > { %p896_p13 = scmp.ne.s32.totalorder %s895_s15, 0 }
  0x4d   : > { %s816_s18 = sand.u32 (!%p896_p13), 1, %s630_s10   ;;  %p897_p3 = scmp.ne.s32.totalorder (!%p896_p13), %s890_s21, 0 }
  0x4e   : > { %178 = sbr.rel (%p896_p13) target bundleno = 185 (0xb9), region = 28  ;;  %s411_s20 = sshll.u32 (!%p896_p13), %s816_s18, 3 }
  0x4f   : > { %s181_s4 = scalar_lea.sflag (!%p896_p13), [#allocation3], %s816_s18  ;;  %s184_s6 = scalar_lea.vmem (!%p896_p13), [#allocation2], %s411_s20 }
  0x55   : > { %613 = dma.done.wait (%p897_p3), %s181_s4, 128  }
  0x56   : > { %615 = vsyncadd (%p897_p3), %s181_s4, 4294967168  ;;  %s412_s5 = sshll.u32 %s816_s18, 1  ;;  %s190_s15 = scalar_lea.sflag [#allocation6], %s816_s18 }
  0x57   : > { %s193_s19 = scalar_lea.vmem [#allocation5], %s412_s5 }
  0x58   : > { %617 = dma.done.wait (%p897_p3), %s190_s15, 32  }
  0x59   : > { %619 = vsyncadd (%p897_p3), %s190_s15, 4294967264  ;;  %v219_v0 = vld [vmem:[%s184_s6] sm:$0x3]  ;;  %v220_v1 = vld [vmem:[%s184_s6 + $0x2] sm:$0x3]  ;;  %vm277_vm4 = vcmask 1041408  }
  0x5a   : > { %v221_v2 = vld [vmem:[%s184_s6 + $0x4] sm:$0x3]  ;;  %v228_v3 = vmax.f32 %v219_v0, %v220_v1  ;;  %v222_v4 = vld [vmem:[%s184_s6 + $0x6] sm:$0x3]  ;;  %v223_v21 = vld [vmem:[%s193_s19] sm:$0x3] }
  0x5b   : > { %vm224_vm0 = vcmp.eq.s32.totalorder %v223_v21, 0  ;;  %vm225_vm1 = vcmp.eq.s32.totalorder %v223_v21, 1  ;;  %vm226_vm2 = vcmp.eq.s32.totalorder %v223_v21, 2  ;;  %vm227_vm3 = vcmp.eq.s32.totalorder %v223_v21, 3  ;;  %s217_s21 = scalar_lea.vmem [#allocation7], %s816_s18  ;;  %s413_s30 = sshll.u32 %s638_s12, 4 }
  0x5c   : > { %v229_v5 = vmax.f32 %v228_v3, %v221_v2  ;;  %v249_v23 = vsel %vm224_vm0, %v219_v0, 0.0  ;;  %s300_s26 = sshll.u32 %s217_s21, 4  ;;  %s837_s29 = scalar_lea.hbm %s886_s2, %s413_s30  ;;  %s832_s26 = int_to_ptr.vmem [resolvable:$true] %s300_s26 }
  0x5d   : > { %v250_v24 = vsel %vm225_vm1, %v220_v1, %v249_v23  ;;  %s287_s3 = scalar_lea.sflag [#allocation4], %s816_s18  ;;  %s560_s25 = scalar_lea.vmem %s832_s26, 16 }
  0x5e   : > { %v230_v6 = vmax.f32 %v229_v5, %v222_v4  ;;  %v251_v25 = vsel %vm226_vm2, %v221_v2, %v250_v24  ;;  %p561_p8 = scmp.ne.s32.totalorder %s832_s26, %s560_s25  ;;  %p898_p0 = scmp.ne.s32.totalorder %s891_s22, 0 }
  0x5f   : > { %v252_v29 = vsel %vm227_vm3, %v222_v4, %v251_v25  ;;  %s652_s12 = smov [#allocation7]  }
  0x60   : > { %v231_v7 = vsub.f32 %v219_v0, %v230_v6  ;;  %v234_v8 = vsub.f32 %v220_v1, %v230_v6  ;;  %v237_v9 = vsub.f32 %v221_v2, %v230_v6  ;;  %v240_v10 = vsub.f32 %v222_v4, %v230_v6  ;;  %p562_p11 = pnand %p561_p8, %p898_p0  ;;  %s564_s7 = sshll.u32 %s652_s12, 4  ;;  %s565_s7 = int_to_ptr.vmem [resolvable:$false] %s564_s7 }
  0x61   : > { %s566_s8 = scalar_lea.vmem %s565_s7, 32  ;;  %p567_p7 = scmp.lt.s32.totalorder %s832_s26, %s565_s7 }
  0x62   : > { %v232_v11 = vmul.f32 1.442695, %v231_v7  ;;  %v235_v12 = vmul.f32 1.442695, %v234_v8  ;;  %v238_v13 = vmul.f32 1.442695, %v237_v9  ;;  %p563_p4 = pneg %p562_p11  ;;  %p568_p10 = scmp.lt.s32.totalorder %s566_s8, %s560_s25 }
  0x63   : > { %v241_v14 = vmul.f32 1.442695, %v240_v10 }
  0x64   : > { %486 = vpow2.f32 %v232_v11  ;;  %p569_p12 = por %p568_p10, %p567_p7 }
  0x65   : > { %488 = vpow2.f32 %v235_v12 }
  0x66   : > { %490 = vpow2.f32 %v238_v13  ;;  %p570_p9 = pnand %p569_p12, %p563_p4 }
  0x67   : > { %492 = vpow2.f32 %v241_v14 }
  0x6e   : > { %v487_v15 = vpop.eup %486 }
  0x6f   : > { %v489_v16 = vpop.eup %488 }
  0x70   : > { %v491_v17 = vpop.eup %490  ;;  %v243_v18 = vadd.f32 %v489_v16, %v487_v15 }
  0x71   : > { %v493_v19 = vpop.eup %492 }
  0x72   : > { %v244_v20 = vadd.f32 %v491_v17, %v243_v18 }
  0x74   : > { %v245_v22 = vadd.f32 %v493_v19, %v244_v20 }
  0x76   : > { %494 = vlog2.f32 %v245_v22 }
  0x77   : > { %496 = vrcp.f32 %v245_v22 }
  0x80   : > { %v495_v26 = vpop.eup %494 }
  0x81   : > { %v497_v27 = vpop.eup %496  ;;  %v247_v28 = vmul.f32 0.6931472, %v495_v26 }
  0x82   : > { %v260_v30 = vmul.f32 %v497_v27, %v487_v15  ;;  %v262_v31 = vmul.f32 %v497_v27, %v489_v16  ;;  %v265_v36 = vmul.f32 %v497_v27, %v491_v17  ;;  %v268_v40 = vmul.f32 %v497_v27, %v493_v19 }
  0x83   : > { %v248_v32 = vadd.f32 %v247_v28, %v230_v6 }
  0x84   : > { %v261_v34 = vmul.f32 %v260_v30, %v260_v30  ;;  %v263_v35 = vmul.f32 %v262_v31, %v262_v31  ;;  %v266_v39 = vmul.f32 %v265_v36, %v265_v36  ;;  %v269_v42 = vmul.f32 %v268_v40, %v268_v40 }
  0x85   : > { %v254_v33 = vsub.f32 %v252_v29, %v248_v32  ;;  %v253_v45 = vsub.f32 %v248_v32, %v252_v29 }
  0x86   : > { %v264_v38 = vadd.f32 %v263_v35, %v261_v34 }
  0x87   : > { %v255_v37 = vmul.f32 1.442695, %v254_v33  ;;  %v273_v51 = vmul.f32 0.25, %v253_v45 }
  0x88   : > { %v267_v41 = vadd.f32 %v266_v39, %v264_v38 }
  0x89   : > { %498 = vpow2.f32 %v255_v37 }
  0x8a   : > { %v270_v43 = vadd.f32 %v269_v42, %v267_v41 }
  0x93   : > { %v499_v44 = vpop.eup %498 }
  0x94   : > { %v257_v46 = vsub.f32 1.0, %v499_v44  ;;  %v271_v47 = vmul.f32 %v499_v44, %v499_v44 }
  0x96   : > { %v258_v48 = vmax.f32 %v257_v46, 0.0  ;;  %v274_v49 = vsub.f32 %v270_v43, %v271_v47 }
  0x98   : > { %v272_v50 = vmul.f32 %v258_v48, %v258_v48 }
  0x9a   : > { %v275_v52 = vadd.f32 %v274_v49, %v272_v50 }
  0x9c   : > { %v276_v53 = vmul.f32 %v275_v52, %v273_v51 }
  0x9e   : > { %v278_v54 = vsel %vm277_vm4, %v276_v53, 0.0 }
  0x9f   : > { %v279_v55 = vrot.slane %v278_v54, 4 }
  0xa1   : > { %v280_v56 = vadd.f32 %v279_v55, %v278_v54 }
  0xa3   : > { %v281_v57 = vrot.slane %v280_v56, 2 }
  0xa5   : > { %v282_v58 = vadd.f32 %v281_v57, %v280_v56 }
  0xa7   : > { %v283_v59 = vrot.slane %v282_v58, 1 }
  0xa9   : > { %v284_v60 = vadd.f32 %v283_v59, %v282_v58 }
  0xab   : > { %285 = vst [vmem:[%s217_s21] sm:$0x1] %v284_v60 }
  0xac   : > { %573 = shalt.err (!%p570_p9)
}
  0xad   : > { %s574_s16 = scalar_lea.hbm %s837_s29, 16  ;;  %s578_s4 = scalar_lea.hbm %s886_s2, 32 }
  0xae   : > { %p575_p1 = scmp.ne.s32.totalorder %s837_s29, %s574_s16  ;;  %p579_p5 = scmp.lt.u32.totalorder %s837_s29, %s886_s2 }
  0xaf   : > { %p580_p13 = scmp.lt.u32.totalorder %s578_s4, %s574_s16  ;;  %p582_p8 = scmp.lt.u32.totalorder %s574_s16, %s837_s29 }
  0xb0   : > { %p576_p6 = pnand %p575_p1, %p898_p0 }
  0xb1   : > { %p581_p3 = por %p580_p13, %p579_p5 }
  0xb2   : > { %p577_p2 = pneg %p576_p6 }
  0xb3   : > { %p583_p11 = por %p582_p8, %p581_p3 }
  0xb5   : > { %p584_p4 = pnand %p583_p11, %p577_p2 }
  0xb7   : > { %587 = shalt.err (!%p584_p4)
}
  0xb8   : > { %421 = dma.vmem_to_hbm [thread:$0]  (%p898_p0), %s832_s26, 16, %s837_s29, %s287_s3  }
  0xb9 PF: > { %s312_s15 = sand.u32 1, %s626_s9   ;;  %p899_p7 = scmp.ne.s32.totalorder %s892_s24, 0 }
  0xba   : > { %p900_p10 = scmp.ge.s32.totalorder %s646_s14, 2  ;;  %s313_s19 = scalar_lea.sflag [#allocation4], %s312_s15 }
  0xbc   : > { %p431_p12 = pnand %p900_p10, %p899_p7 }
  0xbe   : > { %621 = dma.done.wait (!%p431_p12), %s313_s19, 16  }
  0xbf   : > { %623 = vsyncadd (!%p431_p12), %s313_s19, 4294967280  ;;  %s21_s14 = sadd.s32 1, %s646_s14   ;;  %s901_s9 = smov %s630_s10 }
  0xc0   : > { %p18_p9 = scmp.ge.s32.totalorder %s21_s14, 4   ;;  %s902_s10 = smov %s634_s11 }
  0xc1   : > { %s903_s11 = smov %s724_s23  ;;  %s904_s12 = smov %s642_s13 }
  0xc2   : > { %s905_s13 = smov %s907_s17  ;;  %20 = sbr.rel (!%p18_p9) target bundleno = 8 (0x8), region = 86 }
  0xc9   :  { %317 = vsyncpa [#allocation3], 1 }
  0xca   :  { %319 = vsyncpa [#allocation3 + $0x1], 1 }
  0xcb   :  { %320 = vsyncpa [#allocation6], 1 }
  0xcc   :  { %322 = vsyncpa [#allocation6 + $0x1], 1 }
  0xcd   :  { %323 = vsyncpa [#allocation4], 1 }
  0xce   :  { %325 = vsyncpa [#allocation4 + $0x1], 1 }

</bundles_post_ra>
